<compile_context>
chip_gen: v7x
topology: tpu7x:2x2x1
jax: 0.10.0
libtpu: 0.0.40
codegen_flags: <defaults>
</compile_context>

<pallas_src>
import functools

import jax
import jax.numpy as jnp
from jax.experimental import pallas as pl
from jax.experimental.pallas import tpu as pltpu

_LANE = 128


# ----------------------------- small helpers ------------------------------- #

def _round_up(x, m):
    return ((x + m - 1) // m) * m


def _cdiv(a, b):
    return (a + b - 1) // b


def _device_kind():
    try:
        return jax.devices()[0].device_kind.lower()
    except Exception:
        return ""


def _vmem_capacity_bytes():
    try:
        info = pltpu.get_tpu_info()
        cap = int(getattr(info, "vmem_capacity_bytes", 0))
        if cap > 0:
            return cap
    except Exception:
        pass
    return 64 * 2**20  # conservative fallback (v7x per-TC VMEM)


def _spec(block_shape, index_map, buffers=None):
    """BlockSpec with an optional explicit pipeline buffer count.

    buffers=1 single-buffers resident blocks (W1 fast path, W2, biases); falls
    back to a plain BlockSpec if pipeline_mode / pl.Buffered is unavailable."""
    if buffers is not None and hasattr(pl, "Buffered"):
        try:
            return pl.BlockSpec(block_shape, index_map,
                                pipeline_mode=pl.Buffered(buffers))
        except TypeError:
            pass
    return pl.BlockSpec(block_shape, index_map)


def _pad2(a, rows, cols):
    pr, pc = rows - a.shape[0], cols - a.shape[1]
    if pr or pc:
        a = jnp.pad(a, ((0, pr), (0, pc)))
    return a


def _pick_tile_b(batch, sublane, target):
    """Sublane-aligned batch tile; balanced tiles to avoid gross over-padding."""
    b_al = _round_up(batch, sublane)
    if b_al <= target:
        return b_al
    n_tiles = _cdiv(b_al, target)
    return _round_up(_cdiv(b_al, n_tiles), sublane)


def _pick_tile_k(in_p, target=512):
    """tile_k = (divisor of in_p, in lane units) closest to `target` -> zero K
    over-padding for non-power-of-two in_dim."""
    n = in_p // _LANE
    divisors = [d * _LANE for d in range(1, n + 1) if n % d == 0]
    return min(divisors, key=lambda t: (abs(t - target), -t))


# -------------------------------- kernels ----------------------------------- #

def _mlp_fused_kernel(x_ref, w1_ref, b1_ref, w2_ref, b2_ref, o_ref):
    # No K split: W1 fully resident. Grid = (batch tiles,).
    h = jnp.dot(x_ref[...], w1_ref[...], preferred_element_type=jnp.float32)
    h = jnp.maximum(h + b1_ref[...].astype(jnp.float32), 0.0)
    y = jnp.dot(h.astype(w2_ref.dtype), w2_ref[...],
                preferred_element_type=jnp.float32)
    o_ref[...] = (y + b2_ref[...].astype(jnp.float32)).astype(o_ref.dtype)


def _mlp_ksplit_kernel(x_ref, w1_ref, b1_ref, w2_ref, b2_ref, o_ref, h_acc):
    # Grid = (batch tiles, K tiles); K (reduction over in_dim) is the last axis.
    k = pl.program_id(1)

    @pl.when(k == 0)
    def _():
        h_acc[...] = jnp.zeros_like(h_acc)

    h_acc[...] += jnp.dot(x_ref[...], w1_ref[...],
                          preferred_element_type=jnp.float32)

    @pl.when(k == pl.num_programs(1) - 1)
    def _():
        # Epilogue in f32: bias + ReLU, then second matmul + bias.
        h = jnp.maximum(h_acc[...] + b1_ref[...].astype(jnp.float32), 0.0)
        y = jnp.dot(h.astype(w2_ref.dtype), w2_ref[...],
                    preferred_element_type=jnp.float32)
        o_ref[...] = (y + b2_ref[...].astype(jnp.float32)).astype(o_ref.dtype)


# ------------------------------ forward pass -------------------------------- #

@functools.partial(jax.jit, static_argnames=("out_dim", "tile_b", "tile_k"))
def _projection_forward(x, w1_p, b1_p, w2_p, b2_p, *, out_dim,
                        tile_b=None, tile_k=None):
    B, in_dim = x.shape
    in_p, out_p = w1_p.shape

    compute_dtype = w1_p.dtype
    out_dtype = x.dtype
    sublane = 16 if compute_dtype == jnp.bfloat16 else 8
    cb = jnp.dtype(compute_dtype).itemsize
    ob = jnp.dtype(out_dtype).itemsize

    kind = _device_kind()
    vmem_budget = int(0.75 * _vmem_capacity_bytes())  # ~48 MiB v7x, ~96 MiB v5e/v6e

    # ---------------- batch tile ----------------
    if tile_b is None:
        target_b = 384 if "v7" in kind else 512
        tile_b = _pick_tile_b(B, sublane, target_b)
        # v7x megacore: keep both TensorCores busy -> at least 2 batch tiles
        # whenever the batch is big enough to be worth splitting.
        if "v7" in kind and tile_b >= 256 and _round_up(B, sublane) == tile_b:
            tile_b = _round_up(_cdiv(tile_b, 2), sublane)
    else:
        tile_b = max(_round_up(tile_b, sublane), sublane)

    # ---------------- VMEM footprint models ----------------
    def fast_bytes(tb):
        return (2 * tb * in_p * cb          # x tiles (double-buffered)
                + in_p * out_p * cb          # W1 resident (single-buffered)
                + out_p * out_p * cb         # W2 resident (single-buffered)
                + 2 * out_p * 4              # biases (f32)
                + 2 * tb * out_p * ob        # out tiles (double-buffered)
                + 2 * tb * out_p * 4)        # f32 h / y intermediates

    def ksplit_bytes(tb, tk):
        return (2 * tb * tk * cb             # x tiles
                + 2 * tk * out_p * cb         # W1 K-slabs (double-buffered)
                + out_p * out_p * cb          # W2 resident (single-buffered)
                + 2 * out_p * 4               # biases
                + 2 * tb * out_p * ob         # out tiles
                + tb * out_p * 4              # f32 h accumulator scratch
                + 2 * tb * out_p * 4)         # epilogue f32 intermediates

    def fits(nbytes):
        return int(nbytes * 1.25) + (4 << 20) <= vmem_budget

    # ---------------- plan: fast path vs K-split ----------------
    use_fast = (tile_k is None) and fits(fast_bytes(tile_b))

    if not use_fast:
        if tile_k is None:
            tile_k = _pick_tile_k(in_p, target=512)
        else:
            tile_k = min(_round_up(tile_k, _LANE), in_p)
            if in_p % tile_k != 0:   # keep K padding-free
                tile_k = _pick_tile_k(in_p, target=tile_k)
        # Shrink tiles (rarely needed) until the plan fits the VMEM budget.
        while tile_b > 2 * sublane and not fits(ksplit_bytes(tile_b, tile_k)):
            tile_b = max(_round_up(tile_b // 2, sublane), sublane)
        while tile_k > _LANE and not fits(ksplit_bytes(tile_b, tile_k)):
            new_tk = _pick_tile_k(in_p, target=tile_k // 2)
            if new_tk >= tile_k:
                break
            tile_k = new_tk
        # TODO(synk): add output-N tiling for out_dim where even a bf16 resident
        # W2 exceeds the per-core VMEM budget (very wide projections on v7x).

    B_p = _round_up(B, tile_b)
    n_b_tiles = B_p // tile_b

    # Zero padding is inert: padded x cols x padded W1 rows contribute 0, padded
    # hidden cols get bias 0 -> ReLU 0 -> contribute 0 through W2.
    x_c = x.astype(compute_dtype)
    pad_b, pad_k = B_p - B, in_p - in_dim
    if pad_b or pad_k:
        x_c = jnp.pad(x_c, ((0, pad_b), (0, pad_k)))

    # ---------------- cost estimate / VMEM limit ----------------
    flops = 2 * B_p * in_p * out_p + 2 * B_p * out_p * out_p
    w1_reads = 1 if use_fast else n_b_tiles  # W1 re-streamed per batch tile
    bytes_accessed = (B_p * in_p * cb
                      + w1_reads * in_p * out_p * cb
                      + out_p * out_p * cb
                      + 2 * out_p * 4
                      + B_p * out_p * ob)
    cost = pl.CostEstimate(flops=int(flops), transcendentals=0,
                           bytes_accessed=int(bytes_accessed))

    need = fast_bytes(tile_b) if use_fast else ksplit_bytes(tile_b, tile_k)
    vmem_limit = int(min(max(int(need * 1.25) + (4 << 20), 32 << 20), vmem_budget))

    # ---------------- pallas_call ----------------
    if use_fast:
        grid = (n_b_tiles,)
        in_specs = [
            _spec((tile_b, in_p), lambda i: (i, 0)),               # x tile
            _spec((in_p, out_p), lambda i: (0, 0), buffers=1),     # W1 resident
            _spec((1, out_p), lambda i: (0, 0), buffers=1),        # b1 resident
            _spec((out_p, out_p), lambda i: (0, 0), buffers=1),    # W2 resident
            _spec((1, out_p), lambda i: (0, 0), buffers=1),        # b2 resident
        ]
        out_spec = _spec((tile_b, out_p), lambda i: (i, 0))
        kernel = _mlp_fused_kernel
        scratch = ()
        dim_sem = ("parallel",)
    else:
        grid = (n_b_tiles, in_p // tile_k)
        in_specs = [
            _spec((tile_b, tile_k), lambda i, k: (i, k)),          # x tile
            _spec((tile_k, out_p), lambda i, k: (k, 0)),           # W1 K-slab
            _spec((1, out_p), lambda i, k: (0, 0), buffers=1),     # b1 resident
            _spec((out_p, out_p), lambda i, k: (0, 0), buffers=1),  # W2 resident
            _spec((1, out_p), lambda i, k: (0, 0), buffers=1),     # b2 resident
        ]
        out_spec = _spec((tile_b, out_p), lambda i, k: (i, 0))
        kernel = _mlp_ksplit_kernel
        scratch = (pltpu.VMEM((tile_b, out_p), jnp.float32),)
        dim_sem = ("parallel", "arbitrary")

    y_p = pl.pallas_call(
        kernel,
        out_shape=jax.ShapeDtypeStruct((B_p, out_p), out_dtype),
        grid_spec=pltpu.PrefetchScalarGridSpec(
            num_scalar_prefetch=0,
            grid=grid,
            in_specs=in_specs,
            out_specs=out_spec,
            scratch_shapes=scratch,
        ),
        compiler_params=pltpu.CompilerParams(
            dimension_semantics=dim_sem,
            vmem_limit_bytes=vmem_limit,
        ),
        cost_estimate=cost,
    )(x_c, w1_p, b1_p, w2_p, b2_p)

    return y_p[:B, :out_dim]


class ProjectionLayerPallas:
    """Pallas TPU port of ProjectionLayer: Linear(in,out) -> ReLU -> Linear(out,out).

    Weights are padded to lane multiples and (optionally) cast to bf16 once at
    construction, hoisting that work out of the per-call jit path."""

    def __init__(self, w1, b1, w2, b2, *, weight_dtype=jnp.bfloat16):
        in_dim, out_dim = w1.shape
        assert b1.shape == (out_dim,)
        assert w2.shape == (out_dim, out_dim)
        assert b2.shape == (out_dim,)
        self.in_dim, self.out_dim = in_dim, out_dim
        in_p = _round_up(in_dim, _LANE)
        out_p = _round_up(out_dim, _LANE)
        self.w1_p = _pad2(w1.astype(weight_dtype), in_p, out_p)
        self.w2_p = _pad2(w2.astype(weight_dtype), out_p, out_p)
        self.b1_p = _pad2(b1.astype(jnp.float32).reshape(1, -1), 1, out_p)
        self.b2_p = _pad2(b2.astype(jnp.float32).reshape(1, -1), 1, out_p)

    def __call__(self, x, *, tile_b=None, tile_k=None):
        return _projection_forward(x, self.w1_p, self.b1_p, self.w2_p, self.b2_p,
                                   out_dim=self.out_dim,
                                   tile_b=tile_b, tile_k=tile_k)


# --------------------------------- demo ------------------------------------- #

def _init_linear(key, fan_in, fan_out, dtype=jnp.float32):
    # Deterministic init mimicking torch.nn.Linear (uniform +/- 1/sqrt(fan_in)).
    kw, kb = jax.random.split(key)
    bound = 1.0 / (fan_in ** 0.5)
    w = jax.random.uniform(kw, (fan_in, fan_out), dtype, minval=-bound, maxval=bound)
    b = jax.random.uniform(kb, (fan_out,), dtype, minval=-bound, maxval=bound)
    return w, b


def _ref_bf16(x, w1, b1, w2, b2):
    # Reference with the same bf16 casts the fast path applies (f32 math otherwise).
    f32 = jnp.float32
    xb = x.astype(jnp.bfloat16).astype(f32)
    w1b = w1.astype(jnp.bfloat16).astype(f32)
    w2b = w2.astype(jnp.bfloat16).astype(f32)
    h = jnp.maximum(xb @ w1b + b1.astype(f32), 0.0)
    h = h.astype(jnp.bfloat16).astype(f32)
    return h @ w2b + b2.astype(f32)


if __name__ == "__main__":
    key = jax.random.PRNGKey(0)
    k_x, k_l1, k_l2, k_x2 = jax.random.split(key, 4)

    # --- Small exact check (f32 weights, single grid step, fast path) ---
    batch, in_dim, out_dim = 8, 32, 32
    x = jax.random.normal(k_x, (batch, in_dim), dtype=jnp.float32)
    w1, b1 = _init_linear(k_l1, in_dim, out_dim)
    w2, b2 = _init_linear(k_l2, out_dim, out_dim)

    layer_f32 = ProjectionLayerPallas(w1, b1, w2, b2, weight_dtype=jnp.float32)
    out = layer_f32(x)
    jax.block_until_ready(out)
    ref = jnp.maximum(x @ w1 + b1, 0.0) @ w2 + b2
    assert out.shape == (batch, out_dim)
    assert jnp.allclose(out, ref, atol=1e-4, rtol=1e-4), "f32 path mismatch"

    # --- bf16 default (fast path, possibly multiple batch tiles) ---
    B2, D2 = 512, 384
    x2 = jax.random.normal(k_x2, (B2, D2), dtype=jnp.float32)
    w1b, b1b = _init_linear(k_l1, D2, D2)
    w2b, b2b = _init_linear(k_l2, D2, D2)
    layer_bf16 = ProjectionLayerPallas(w1b, b1b, w2b, b2b)   # bf16 weights

    out2 = layer_bf16(x2)
    jax.block_until_ready(out2)
    ref2 = _ref_bf16(x2, w1b, b1b, w2b, b2b)
    assert jnp.allclose(out2, ref2, atol=1e-2, rtol=1e-2), "bf16 fast path mismatch"

    # --- bf16 K-split path (forced small tiles -> (batch, K) grid + f32 acc) ---
    out3 = layer_bf16(x2, tile_b=256, tile_k=128)
    jax.block_until_ready(out3)
    assert jnp.allclose(out3, ref2, atol=1e-2, rtol=1e-2), "bf16 K-split path mismatch"

    print("KERNEL_OK")
</pallas_src>

<mosaic_0001>
module attributes {stable_mosaic.version = 11 : i64} {
  func.func @_mlp_fused_kernel(%arg0: i32, %arg1: memref<8x128xf32, #tpu.memory_space<vmem>>, %arg2: memref<128x128xf32, #tpu.memory_space<vmem>>, %arg3: memref<1x128xf32, #tpu.memory_space<vmem>>, %arg4: memref<128x128xf32, #tpu.memory_space<vmem>>, %arg5: memref<1x128xf32, #tpu.memory_space<vmem>>, %arg6: memref<8x128xf32, #tpu.memory_space<vmem>>) attributes {dimension_semantics = [#tpu.dimension_semantics<parallel>], iteration_bounds = array<i64: 1>, scalar_prefetch = 0 : i64, scratch_operands = 0 : i64, tpu.core_type = #tpu.core_type<tc>, window_params = [{transform_indices = @transform_0, window_bounds = array<i64: 8, 128>}, {pipeline_mode = #tpu.pipeline_mode<synchronous>, transform_indices = @transform_1, window_bounds = array<i64: 128, 128>}, {pipeline_mode = #tpu.pipeline_mode<synchronous>, transform_indices = @transform_2, window_bounds = array<i64: 1, 128>}, {pipeline_mode = #tpu.pipeline_mode<synchronous>, transform_indices = @transform_3, window_bounds = array<i64: 128, 128>}, {pipeline_mode = #tpu.pipeline_mode<synchronous>, transform_indices = @transform_4, window_bounds = array<i64: 1, 128>}, {transform_indices = @transform_5, window_bounds = array<i64: 8, 128>}]} {
    %c0 = arith.constant 0 : index
    %c0_0 = arith.constant 0 : index
    %0 = vector.load %arg1[%c0, %c0_0] : memref<8x128xf32, #tpu.memory_space<vmem>>, vector<8x128xf32>
    %c0_1 = arith.constant 0 : index
    %c0_2 = arith.constant 0 : index
    %1 = vector.load %arg2[%c0_1, %c0_2] : memref<128x128xf32, #tpu.memory_space<vmem>>, vector<128x128xf32>
    %cst = arith.constant dense<0.000000e+00> : vector<8x128xf32>
    %2 = tpu.matmul %0, %1, %cst {dimension_numbers = #tpu.dot_dimension_numbers<[1], [0], [0], [1], [0, 0, 1, 1], [], []>} : vector<8x128xf32>, vector<128x128xf32>, vector<8x128xf32> -> vector<8x128xf32>
    %c0_3 = arith.constant 0 : index
    %c0_4 = arith.constant 0 : index
    %3 = vector.load %arg3[%c0_3, %c0_4] : memref<1x128xf32, #tpu.memory_space<vmem>>, vector<1x128xf32>
    %4 = vector.broadcast %3 : vector<1x128xf32> to vector<8x128xf32>
    %5 = arith.addf %2, %4 : vector<8x128xf32>
    %cst_5 = arith.constant 0.000000e+00 : f32
    %6 = vector.broadcast %cst_5 : f32 to vector<8x128xf32>
    %7 = arith.maximumf %5, %6 : vector<8x128xf32>
    %c0_6 = arith.constant 0 : index
    %c0_7 = arith.constant 0 : index
    %8 = vector.load %arg4[%c0_6, %c0_7] : memref<128x128xf32, #tpu.memory_space<vmem>>, vector<128x128xf32>
    %cst_8 = arith.constant dense<0.000000e+00> : vector<8x128xf32>
    %9 = tpu.matmul %7, %8, %cst_8 {dimension_numbers = #tpu.dot_dimension_numbers<[1], [0], [0], [1], [0, 0, 1, 1], [], []>} : vector<8x128xf32>, vector<128x128xf32>, vector<8x128xf32> -> vector<8x128xf32>
    %c0_9 = arith.constant 0 : index
    %c0_10 = arith.constant 0 : index
    %10 = vector.load %arg5[%c0_9, %c0_10] : memref<1x128xf32, #tpu.memory_space<vmem>>, vector<1x128xf32>
    %11 = vector.broadcast %10 : vector<1x128xf32> to vector<8x128xf32>
    %12 = arith.addf %9, %11 : vector<8x128xf32>
    %c0_11 = arith.constant 0 : index
    %c0_12 = arith.constant 0 : index
    %13 = vector.load %arg6[%c0_11, %c0_12] : memref<8x128xf32, #tpu.memory_space<vmem>>, vector<8x128xf32>
    tpu.vector_store %arg6[%c0_11, %c0_12], %12 {strides = array<i32>} : memref<8x128xf32, #tpu.memory_space<vmem>>, vector<8x128xf32>,
    return
  }
  func.func @transform_0(%arg0: i32) -> (i32, i32) {
    %c0_i32 = arith.constant 0 : i32
    %c0_i32_0 = arith.constant 0 : i32
    return %arg0, %c0_i32 : i32, i32
  }
  func.func @transform_1(%arg0: i32) -> (i32, i32) {
    %c0_i32 = arith.constant 0 : i32
    %c0_i32_0 = arith.constant 0 : i32
    %c0_i32_1 = arith.constant 0 : i32
    return %c0_i32, %c0_i32_0 : i32, i32
  }
  func.func @transform_2(%arg0: i32) -> (i32, i32) {
    %c0_i32 = arith.constant 0 : i32
    %c0_i32_0 = arith.constant 0 : i32
    %c0_i32_1 = arith.constant 0 : i32
    return %c0_i32, %c0_i32_0 : i32, i32
  }
  func.func @transform_3(%arg0: i32) -> (i32, i32) {
    %c0_i32 = arith.constant 0 : i32
    %c0_i32_0 = arith.constant 0 : i32
    %c0_i32_1 = arith.constant 0 : i32
    return %c0_i32, %c0_i32_0 : i32, i32
  }
  func.func @transform_4(%arg0: i32) -> (i32, i32) {
    %c0_i32 = arith.constant 0 : i32
    %c0_i32_0 = arith.constant 0 : i32
    %c0_i32_1 = arith.constant 0 : i32
    return %c0_i32, %c0_i32_0 : i32, i32
  }
  func.func @transform_5(%arg0: i32) -> (i32, i32) {
    %c0_i32 = arith.constant 0 : i32
    %c0_i32_0 = arith.constant 0 : i32
    return %arg0, %c0_i32 : i32, i32
  }
}

</mosaic_0001>

<bundles_post_ra>
// kernel: _projection_forward.1
= control target key start
LH: loop header
LB: loop body
LE: loop exit
PB: predicated region body
PF: predicated region fallthrough
CT: control target
= control target key end

     0   :  { %10 = vsyncpa [#allocation3], 0  ;;  %s587_s0 = inlined_call_operand.vmem [shape: f32[8,128], index: 0, kind: input, shape index: {}]   ;;  %s588_s1 = inlined_call_operand.hbm [shape: f32[128,128], index: 1, kind: input, shape index: {}]   ;;  %s589_s2 = inlined_call_operand.vmem [shape: f32[1,128], index: 2, kind: input, shape index: {}]   ;;  %s590_s3 = inlined_call_operand.hbm [shape: f32[128,128], index: 3, kind: input, shape index: {}]   ;;  %s591_s4 = inlined_call_operand.vmem [shape: f32[1,128], index: 4, kind: input, shape index: {}]   ;;  %s592_s5 = inlined_call_operand.hbm [shape: f32[8,128], index: 5, kind: output, shape index: {}]  }
   0x1   :  { %11 = vsyncpa [#allocation6], 0 }
   0x2   :  { %12 = vsyncpa [#allocation4], 0  ;;  %s488_s18 = smov [#allocation2]   ;;  %s416_s22 = scalar_lea.hbm %s588_s1, 2048 }
   0x3   :  { %s20_s19 = sshll.u32 %s488_s18, 4  ;;  %p417_p0 = scmp.ne.s32.totalorder %s588_s1, %s416_s22  ;;  %s21_s19 = int_to_ptr.vmem [resolvable:$true] %s20_s19 }
   0x4   :  { %p420_p1 = scmp.lt.u32.totalorder %s416_s22, %s588_s1 }
   0x6   :  { %p422_p2 = pnand %p420_p1, %p417_p0 }
   0x8   :  { %425 = shalt.err (!%p422_p2)
}
   0x9   :  { %s426_s27 = scalar_lea.vmem %s21_s19, 2048  ;;  %p431_p4 = scmp.lt.s32.totalorder %s21_s19, %s21_s19 }
   0xa   :  { %p427_p3 = scmp.ne.s32.totalorder %s21_s19, %s426_s27  ;;  %p432_p5 = scmp.lt.s32.totalorder %s426_s27, %s426_s27 }
   0xc   :  { %p433_p6 = por %p432_p5, %p431_p4 }
   0xe   :  { %p434_p7 = pnand %p433_p6, %p427_p3 }
  0x10   :  { %437 = shalt.err (!%p434_p7)
}
  0x11   :  { %s489_s28 = smov 128   ;;  %s490_s29 = smov 8  }
  0x12   :  { %26 = dma.hbm_to_vmem [thread:$0]  %s588_s1, 2048, %s21_s19, [#allocation3], %s489_s28, %s489_s28, %s490_s29  }
  0x13   :  { %s491_s7 = smov [#allocation5]   ;;  %s438_s11 = scalar_lea.hbm %s590_s3, 2048 }
  0x14   :  { %s34_s8 = sshll.u32 %s491_s7, 4  ;;  %p439_p8 = scmp.ne.s32.totalorder %s590_s3, %s438_s11  ;;  %s35_s8 = int_to_ptr.vmem [resolvable:$true] %s34_s8 }
  0x15   :  { %p442_p9 = scmp.lt.u32.totalorder %s438_s11, %s590_s3 }
  0x17   :  { %p444_p10 = pnand %p442_p9, %p439_p8 }
  0x19   :  { %447 = shalt.err (!%p444_p10)
}
  0x1a   :  { %s448_s16 = scalar_lea.vmem %s35_s8, 2048  ;;  %p453_p12 = scmp.lt.s32.totalorder %s35_s8, %s35_s8 }
  0x1b   :  { %p449_p11 = scmp.ne.s32.totalorder %s35_s8, %s448_s16  ;;  %p454_p13 = scmp.lt.s32.totalorder %s448_s16, %s448_s16 }
  0x1d   :  { %p455_p0 = por %p454_p13, %p453_p12 }
  0x1f   :  { %p456_p1 = pnand %p455_p0, %p449_p11 }
  0x21   :  { %459 = shalt.err (!%p456_p1)
}
  0x22   :  { %40 = dma.hbm_to_vmem [thread:$0]  %s590_s3, 2048, %s35_s8, [#allocation6], %s489_s28, %s489_s28, %s490_s29  }
  0x23   :  { %482 = dma.done.wait [#allocation3], 2048  }
  0x24   :  { %483 = vsyncadd [#allocation3], 4294965248 }
  0x25   :  { %484 = dma.done.wait [#allocation6], 2048  }
  0x26   :  { %485 = vsyncadd [#allocation6], 4294965248  ;;  %v492_v0 = vmov 0.0|0.0   ;;  %vm493_vm0 = vmmov 0   ;;  %v494_v1 = vmov 0.0   ;;  %v50_v2 = vld [vmem:[#allocation2] sm:$0xff] }
  0x27   :  { %360 = vmatprep.subr.bf16.mxu0 %v492_v0  ;;  %322 = vmatprep.mubr.msk.f32.mxu0 %vm493_vm0, %v494_v1  ;;  %v51_v3 = vld [vmem:[#allocation2 + $0x8] sm:$0xff]  ;;  %v52_v4 = vld [vmem:[#allocation2 + $0x10] sm:$0xff]  ;;  %v53_v6 = vld [vmem:[#allocation2 + $0x18] sm:$0xff] }
  0x28   :  { %384 = vmatprep.subr.bf16.mxu1 %v492_v0  ;;  %357 = vmatprep.mubr.msk.f32.mxu1 %vm493_vm0, %v494_v1  ;;  %v361_v5 = vpack.c.bf16 %v51_v3, %v50_v2  ;;  %v364_v7 = vpack.c.bf16 %v53_v6, %v52_v4  ;;  %v54_v8 = vld [vmem:[#allocation2 + $0x20] sm:$0xff]  ;;  %v55_v9 = vld [vmem:[#allocation2 + $0x28] sm:$0xff]  ;;  %v146_v12 = vld [vmem:[#allocation5 + $0x10] sm:$0xff] }
  0x29   :  { %v144_v10 = vld [vmem:[#allocation5] sm:$0xff]  ;;  %v145_v11 = vld [vmem:[#allocation5 + $0x8] sm:$0xff]  ;;  %v147_v13 = vld [vmem:[#allocation5 + $0x18] sm:$0xff]  ;;  %v367_v14 = vpack.c.bf16 %v55_v9, %v54_v8 }
  0x2a   :  { %362 = vmatpush3.bf16.msra.mxu0 %v361_v5  ;;  %v385_v15 = vpack.c.bf16 %v145_v11, %v144_v10  ;;  %v56_v16 = vld [vmem:[#allocation2 + $0x30] sm:$0xff]  ;;  %v57_v17 = vld [vmem:[#allocation2 + $0x38] sm:$0xff]  ;;  %v388_v18 = vpack.c.bf16 %v147_v13, %v146_v12  ;;  %v148_v19 = vld [vmem:[#allocation5 + $0x20] sm:$0xff] }
  0x2b   :  { %363 = vmatprep.subr.bf16.mxu0 %v492_v0  ;;  %v149_v20 = vld [vmem:[#allocation5 + $0x28] sm:$0xff]  ;;  %v370_v21 = vpack.c.bf16 %v57_v17, %v56_v16  ;;  %v58_v22 = vld [vmem:[#allocation2 + $0x40] sm:$0xff]  ;;  %v150_v25 = vld [vmem:[#allocation5 + $0x30] sm:$0xff] }
  0x2c   :  { %386 = vmatpush3.bf16.msra.mxu1 %v385_v15  ;;  %v59_v23 = vld [vmem:[#allocation2 + $0x48] sm:$0xff]  ;;  %v391_v24 = vpack.c.bf16 %v149_v20, %v148_v19  ;;  %v151_v26 = vld [vmem:[#allocation5 + $0x38] sm:$0xff]  ;;  %v60_v28 = vld [vmem:[#allocation2 + $0x50] sm:$0xff] }
  0x2d   :  { %387 = vmatprep.subr.bf16.mxu1 %v492_v0  ;;  %v373_v27 = vpack.c.bf16 %v59_v23, %v58_v22  ;;  %v61_v29 = vld [vmem:[#allocation2 + $0x58] sm:$0xff]  ;;  %v394_v30 = vpack.c.bf16 %v151_v26, %v150_v25  ;;  %v152_v31 = vld [vmem:[#allocation5 + $0x40] sm:$0xff]  ;;  %v153_v32 = vld [vmem:[#allocation5 + $0x48] sm:$0xff] }
  0x2e   :  { %365 = vmatpush3.bf16.msra.mxu0 %v364_v7  ;;  %v376_v33 = vpack.c.bf16 %v61_v29, %v60_v28  ;;  %v62_v34 = vld [vmem:[#allocation2 + $0x60] sm:$0xff]  ;;  %v63_v35 = vld [vmem:[#allocation2 + $0x68] sm:$0xff]  ;;  %v397_v36 = vpack.c.bf16 %v153_v32, %v152_v31  ;;  %v154_v37 = vld [vmem:[#allocation5 + $0x50] sm:$0xff] }
  0x2f   :  { %366 = vmatprep.subr.bf16.mxu0 %v492_v0  ;;  %v155_v38 = vld [vmem:[#allocation5 + $0x58] sm:$0xff]  ;;  %v379_v39 = vpack.c.bf16 %v63_v35, %v62_v34  ;;  %v64_v40 = vld [vmem:[#allocation2 + $0x70] sm:$0xff]  ;;  %v156_v43 = vld [vmem:[#allocation5 + $0x60] sm:$0xff] }
  0x30   :  { %389 = vmatpush3.bf16.msra.mxu1 %v388_v18  ;;  %v65_v41 = vld [vmem:[#allocation2 + $0x78] sm:$0xff]  ;;  %v400_v42 = vpack.c.bf16 %v155_v38, %v154_v37  ;;  %v157_v44 = vld [vmem:[#allocation5 + $0x68] sm:$0xff]  ;;  %v158_v48 = vld [vmem:[#allocation5 + $0x70] sm:$0xff] }
  0x31   :  { %390 = vmatprep.subr.bf16.mxu1 %v492_v0  ;;  %v382_v45 = vpack.c.bf16 %v65_v41, %v64_v40  ;;  %v403_v46 = vpack.c.bf16 %v157_v44, %v156_v43  ;;  %v49_v47 = vld [vmem:[%s587_s0] sm:$0xff]  ;;  %s495_s0 = smov [#allocation7]  }
  0x32   :  { %368 = vmatpush3.bf16.msra.mxu0 %v367_v14  ;;  %v159_v49 = vld [vmem:[#allocation5 + $0x78] sm:$0xff]  ;;  %s244_s23 = sshll.u32 %s495_s0, 4  ;;  %s245_s23 = int_to_ptr.vmem [resolvable:$true] %s244_s23 }
  0x33   :  { %369 = vmatprep.subr.bf16.mxu0 %v492_v0  ;;  %v406_v50 = vpack.c.bf16 %v159_v49, %v158_v48  ;;  %v254_v51 = vld [vmem:[%s589_s2] ss:$0 sm:$0xff]  ;;  %s460_s24 = scalar_lea.vmem %s245_s23, 128  ;;  %p465_p3 = scmp.lt.s32.totalorder %s245_s23, %s245_s23 }
  0x34   :  { %392 = vmatpush3.bf16.msra.mxu1 %v391_v24  ;;  %v255_v56 = vld [vmem:[%s591_s4] ss:$0 sm:$0xff]  ;;  %p461_p2 = scmp.ne.s32.totalorder %s245_s23, %s460_s24  ;;  %p466_p4 = scmp.lt.s32.totalorder %s460_s24, %s460_s24 }
  0x35   :  { %393 = vmatprep.subr.bf16.mxu1 %v492_v0 }
  0x36   :  { %371 = vmatpush3.bf16.msra.mxu0 %v370_v21  ;;  %p467_p5 = por %p466_p4, %p465_p3 }
  0x37   :  { %372 = vmatprep.subr.bf16.mxu0 %v492_v0 }
  0x38   :  { %395 = vmatpush3.bf16.msra.mxu1 %v394_v30  ;;  %p468_p6 = pnand %p467_p5, %p461_p2 }
  0x39   :  { %396 = vmatprep.subr.bf16.mxu1 %v492_v0 }
  0x3a   :  { %374 = vmatpush3.bf16.msra.mxu0 %v373_v27 }
  0x3b   :  { %375 = vmatprep.subr.bf16.mxu0 %v492_v0 }
  0x3c   :  { %398 = vmatpush3.bf16.msra.mxu1 %v397_v36 }
  0x3d   :  { %399 = vmatprep.subr.bf16.mxu1 %v492_v0 }
  0x3e   :  { %377 = vmatpush3.bf16.msra.mxu0 %v376_v33 }
  0x3f   :  { %378 = vmatprep.subr.bf16.mxu0 %v492_v0 }
  0x40   :  { %401 = vmatpush3.bf16.msra.mxu1 %v400_v42 }
  0x41   :  { %402 = vmatprep.subr.bf16.mxu1 %v492_v0 }
  0x42   :  { %380 = vmatpush3.bf16.msra.mxu0 %v379_v39 }
  0x43   :  { %381 = vmatprep.subr.bf16.mxu0 %v492_v0 }
  0x44   :  { %404 = vmatpush3.bf16.msra.mxu1 %v403_v46 }
  0x45   :  { %405 = vmatprep.subr.bf16.mxu1 %v492_v0 }
  0x46   :  { %383 = vmatpush3.bf16.msra.mxu0 %v382_v45 }
  0x48   :  { %407 = vmatpush3.bf16.msra.mxu1 %v406_v50 }
  0x49   :  { %323 = vmatmul.mubr.f32.vlgmr.msra.gmra.mrb[0].mxu0 %v49_v47 }
 0x11c   :  { %v139_v52 = vpop.f32.mrb[0].mxu0 }
 0x11d   :  { %v140_v53 = vadd.f32 %v254_v51, %v139_v52  ;;  %v324_v54 = vpop.f32.mrb[1].mxu0 }
 0x11f   :  { %v143_v55 = vmax.f32 %v140_v53, 0.0 }
 0x121   :  { %358 = vmatmul.mubr.f32.vlgmr.msra.gmra.mrb[0].mxu1 %v143_v55 }
 0x1f4   :  { %v233_v57 = vpop.f32.mrb[0].mxu1 }
 0x1f5   :  { %v234_v58 = vadd.f32 %v255_v56, %v233_v57  ;;  %v359_v59 = vpop.f32.mrb[1].mxu1 }
 0x1f7   :  { %237 = vst [vmem:[#allocation7] sm:$0xff] %v234_v58 }
 0x1f8   :  { %471 = shalt.err (!%p468_p6)
}
 0x1f9   :  { %s472_s26 = scalar_lea.hbm %s592_s5, 128 }
 0x1fa   :  { %p473_p7 = scmp.ne.s32.totalorder %s592_s5, %s472_s26  ;;  %p476_p8 = scmp.lt.u32.totalorder %s472_s26, %s592_s5 }
 0x1fc   :  { %p478_p9 = pnand %p476_p8, %p473_p7 }
 0x1fe   :  { %481 = shalt.err (!%p478_p9)
}
 0x1ff   :  { %247 = dma.vmem_to_hbm [thread:$0]  %s245_s23, 128, %s592_s5, [#allocation4]  }
 0x200   :  { %486 = dma.done.wait [#allocation4], 128  }
 0x201   :  { %487 = vsyncadd [#allocation4], 4294967168 }
 0x202   :  { %251 = vsyncpa [#allocation3], 1 }
 0x203   :  { %252 = vsyncpa [#allocation6], 1 }
 0x204   :  { %253 = vsyncpa [#allocation4], 1 }

</bundles_post_ra>
